<compile_context>
chip_gen: v6e
topology: v6e:2x2x1
jax: 0.10.0
libtpu: 0.0.40
codegen_flags: <defaults>
</compile_context>

<pallas_src>
import functools

import jax
import jax.numpy as jnp
from jax import lax
from jax.experimental import pallas as pl
from jax.experimental.pallas import tpu as pltpu

SUBLANE = 8                      # f32 sublane tile height
GATE_PERM = (0, 2, 1, 3)         # kernel gate order [i, g, f, o] <- PyTorch [i, f, g, o]


def subnet_kernel(x_ref, wx_ref, wh_ref, b_ref, wl_ref, bl_ref, o_ref, *, T, BP):
    """Whole forward in one invocation.

    x_ref  : (T*BP, D)  time-major, batch padded to BP (multiple of 8) rows
    wx_ref : (D, 4H)    fused input->gate weights, kernel gate order [i, g, f, o]
    wh_ref : (H, 4H)    fused hidden->gate weights, same order
    b_ref  : (1, 4H)    fused bias (b_ih + b_hh), same order
    wl_ref : (H, O)     linear weight (transposed)
    bl_ref : (1, O)     linear bias
    o_ref  : (BP, O)    padded output (first B rows valid; sliced in wrapper)
    """
    H = wh_ref.shape[0]
    G4 = 4 * H

    wh = wh_ref[...]                                   # (H, 4H) kept resident

    # Hoisted input projection: one lane-dense (T*BP, D) x (D, 4H) MXU matmul,
    # bias folded in, fully off the serial critical path.
    xp = (jnp.dot(x_ref[...], wx_ref[...], preferred_element_type=jnp.float32)
          + b_ref[...])                                # (T*BP, 4H)
    # Tile-preserving view: each timestep is one aligned (BP, 4H) sublane block.
    xp = xp.reshape(T, BP, G4)

    # Hoisted lane mask selecting the g-gate block (columns [H, 2H)).
    lane = lax.broadcasted_iota(jnp.int32, (BP, G4), 1)
    g_mask = (lane >= H) & (lane < 2 * H)

    h = jnp.zeros((BP, H), jnp.float32)
    c = jnp.zeros((BP, H), jnp.float32)

    # Fully unrolled recurrence (T static & small): only h @ Wh is on the
    # serial critical path; xp[t] is a free, tile-aligned view.
    for t in range(T):
        gates = xp[t] + jnp.dot(h, wh, preferred_element_type=jnp.float32)  # (BP, 4H)

        # Full-vreg sigmoid + tanh (EUP is idle anyway), g block picked by the
        # hoisted lane mask -> act = [sig(i), tanh(g), sig(f), sig(o)].
        act = jnp.where(g_mask, jnp.tanh(gates), jax.nn.sigmoid(gates))

        i_g = act[:, 0 * H:1 * H]
        g_g = act[:, 1 * H:2 * H]
        f_g = act[:, 2 * H:3 * H]
        o_g = act[:, 3 * H:4 * H]

        c = f_g * c + i_g * g_g
        h = o_g * jnp.tanh(c)

    # Dropout on h is identity under eval semantics.  Output stays 8-row padded
    # (lane-dense enough at O=8; wrapper slices the valid rows).
    o_ref[...] = (jnp.dot(h, wl_ref[...], preferred_element_type=jnp.float32)
                  + bl_ref[...]).astype(o_ref.dtype)


def subnet_forward(x_btd, params):
    """x_btd: (B, T, D) float32 — matches the PyTorch batch-first input."""
    wx, wh, b, wl, bl = params
    B, T, D = x_btd.shape
    O = wl.shape[-1]
    BP = ((B + SUBLANE - 1) // SUBLANE) * SUBLANE      # pad batch to 8-row tile

    # Time-major, batch padded to the sublane tile: every per-step block inside
    # the kernel is tile-aligned.  Built once in the wrapper at these sizes.
    x_tbd = jnp.transpose(x_btd, (1, 0, 2))            # (T, B, D)
    x_pad = jnp.zeros((T, BP, D), x_btd.dtype).at[:, :B, :].set(x_tbd)
    x_flat = x_pad.reshape(T * BP, D)
    # TODO(synk): at real T/B, replace this wrapper-side reorder with a grid
    # over T whose BlockSpec index_map gathers (pipelines) x per step, keep h/c
    # in persistent VMEM scratch, cast matmul operands to bf16, and add a
    # parallel batch grid axis so the second v7x TensorCore is used.

    vmem = pl.BlockSpec(memory_space=pltpu.MemorySpace.VMEM)
    kernel = functools.partial(subnet_kernel, T=T, BP=BP)
    y_pad = pl.pallas_call(
        kernel,
        out_shape=jax.ShapeDtypeStruct((BP, O), jnp.float32),
        in_specs=[vmem] * 6,
        out_specs=vmem,
    )(x_flat, wx, wh, b, wl, bl)
    return y_pad[:B]


def init_torch_params(key, in_size, hidden_size, out_size):
    """PyTorch-layout parameters: uniform(-1/sqrt(H), 1/sqrt(H))."""
    ks = jax.random.split(key, 6)
    s = 1.0 / jnp.sqrt(jnp.float32(hidden_size))
    u = lambda k, shape: jax.random.uniform(k, shape, jnp.float32, -s, s)
    w_ih = u(ks[0], (4, hidden_size, in_size))      # weight_ih_l0 viewed (4,H,D), [i,f,g,o]
    w_hh = u(ks[1], (4, hidden_size, hidden_size))  # weight_hh_l0 viewed (4,H,H)
    b_ih = u(ks[2], (4, hidden_size))
    b_hh = u(ks[3], (4, hidden_size))
    w_lin = u(ks[4], (out_size, hidden_size))       # Linear weight (O, H)
    b_lin = u(ks[5], (out_size,))
    return w_ih, w_hh, b_ih, b_hh, w_lin, b_lin


def fuse_params(w_ih, w_hh, b_ih, b_hh, w_lin, b_lin):
    """PyTorch layout -> fused kernel layout (gate order [i, g, f, o])."""
    H = w_ih.shape[1]
    D = w_ih.shape[2]
    perm = jnp.array(GATE_PERM)
    wx = jnp.transpose(w_ih[perm], (2, 0, 1)).reshape(D, 4 * H)   # (D, 4H)
    wh = jnp.transpose(w_hh[perm], (2, 0, 1)).reshape(H, 4 * H)   # (H, 4H)
    b = (b_ih + b_hh)[perm].reshape(1, 4 * H)                     # (1, 4H)
    wl = w_lin.T                                                  # (H, O)
    bl = b_lin.reshape(1, -1)                                     # (1, O)
    return wx, wh, b, wl, bl


def subnet_reference(x_btd, raw_params):
    """Pure-JAX reference using the raw PyTorch-layout parameters."""
    w_ih, w_hh, b_ih, b_hh, w_lin, b_lin = raw_params
    H = w_ih.shape[1]
    W_ih = w_ih.reshape(4 * H, -1)          # (4H, D)  PyTorch weight_ih_l0
    W_hh = w_hh.reshape(4 * H, H)           # (4H, H)
    bias = (b_ih + b_hh).reshape(4 * H)
    B = x_btd.shape[0]

    def step(carry, x_t):
        h, c = carry
        gates = x_t @ W_ih.T + h @ W_hh.T + bias
        i = jax.nn.sigmoid(gates[:, 0 * H:1 * H])
        f = jax.nn.sigmoid(gates[:, 1 * H:2 * H])
        g = jnp.tanh(gates[:, 2 * H:3 * H])
        o = jax.nn.sigmoid(gates[:, 3 * H:4 * H])
        c_new = f * c + i * g
        h_new = o * jnp.tanh(c_new)
        return (h_new, c_new), None

    x_tbd = jnp.transpose(x_btd, (1, 0, 2))
    (h, _), _ = lax.scan(step, (jnp.zeros((B, H), jnp.float32),
                                jnp.zeros((B, H), jnp.float32)), x_tbd)
    return h @ w_lin.T + b_lin


if __name__ == "__main__":
    B, T, D, H, O = 2, 8, 16, 32, 8

    key = jax.random.PRNGKey(0)
    k_x, k_p = jax.random.split(key)
    x = jax.random.normal(k_x, (B, T, D), dtype=jnp.float32)

    raw = init_torch_params(k_p, D, H, O)
    params = fuse_params(*raw)

    y = subnet_forward(x, params)
    jax.block_until_ready(y)

    y_ref = subnet_reference(x, raw)
    assert y.shape == (B, O)
    assert jnp.allclose(y, y_ref, atol=1e-3, rtol=1e-3), "mismatch vs pure-JAX reference"

    print("KERNEL_OK")
</pallas_src>

<mosaic_0001>
module attributes {stable_mosaic.version = 11 : i64} {
  func.func @subnet_kernel(%arg0: memref<64x16xf32, #tpu.memory_space<vmem>>, %arg1: memref<16x128xf32, #tpu.memory_space<vmem>>, %arg2: memref<32x128xf32, #tpu.memory_space<vmem>>, %arg3: memref<1x128xf32, #tpu.memory_space<vmem>>, %arg4: memref<32x8xf32, #tpu.memory_space<vmem>>, %arg5: memref<1x8xf32, #tpu.memory_space<vmem>>, %arg6: memref<8x8xf32, #tpu.memory_space<vmem>>) attributes {dimension_semantics = [], scalar_prefetch = 0 : i64, scratch_operands = 0 : i64, tpu.core_type = #tpu.core_type<tc>} {
    %c0 = arith.constant 0 : index
    %c0_0 = arith.constant 0 : index
    %0 = vector.load %arg2[%c0, %c0_0] : memref<32x128xf32, #tpu.memory_space<vmem>>, vector<32x128xf32>
    %c0_1 = arith.constant 0 : index
    %c0_2 = arith.constant 0 : index
    %1 = vector.load %arg0[%c0_1, %c0_2] : memref<64x16xf32, #tpu.memory_space<vmem>>, vector<64x16xf32>
    %c0_3 = arith.constant 0 : index
    %c0_4 = arith.constant 0 : index
    %2 = vector.load %arg1[%c0_3, %c0_4] : memref<16x128xf32, #tpu.memory_space<vmem>>, vector<16x128xf32>
    %cst = arith.constant dense<0.000000e+00> : vector<64x128xf32>
    %3 = tpu.matmul %1, %2, %cst {dimension_numbers = #tpu.dot_dimension_numbers<[1], [0], [0], [1], [0, 0, 1, 1], [], []>} : vector<64x16xf32>, vector<16x128xf32>, vector<64x128xf32> -> vector<64x128xf32>
    %c0_5 = arith.constant 0 : index
    %c0_6 = arith.constant 0 : index
    %4 = vector.load %arg3[%c0_5, %c0_6] : memref<1x128xf32, #tpu.memory_space<vmem>>, vector<1x128xf32>
    %5 = vector.broadcast %4 : vector<1x128xf32> to vector<64x128xf32>
    %6 = arith.addf %3, %5 : vector<64x128xf32>
    %7 = vector.shape_cast %6 : vector<64x128xf32> to vector<8x8x128xf32>
    %8 = tpu.iota {dimensions = array<i32: 1>} : vector<8x128xi32>
    %c32_i32 = arith.constant 32 : i32
    %9 = vector.broadcast %c32_i32 : i32 to vector<8x128xi32>
    %10 = arith.cmpi sge, %8, %9 : vector<8x128xi32>
    %c64_i32 = arith.constant 64 : i32
    %11 = vector.broadcast %c64_i32 : i32 to vector<8x128xi32>
    %12 = arith.cmpi slt, %8, %11 : vector<8x128xi32>
    %13 = arith.andi %10, %12 : vector<8x128xi1>
    %cst_7 = arith.constant 0.000000e+00 : f32
    %14 = vector.broadcast %cst_7 : f32 to vector<8x32xf32>
    %cst_8 = arith.constant 0.000000e+00 : f32
    %15 = vector.broadcast %cst_8 : f32 to vector<8x32xf32>
    %16 = vector.extract_strided_slice %7 {offsets = [0, 0, 0], sizes = [1, 8, 128], strides = [1, 1, 1]} : vector<8x8x128xf32> to vector<1x8x128xf32>
    %17 = vector.shape_cast %16 : vector<1x8x128xf32> to vector<8x128xf32>
    %cst_9 = arith.constant dense<0.000000e+00> : vector<8x128xf32>
    %18 = tpu.matmul %14, %0, %cst_9 {dimension_numbers = #tpu.dot_dimension_numbers<[1], [0], [0], [1], [0, 0, 1, 1], [], []>} : vector<8x32xf32>, vector<32x128xf32>, vector<8x128xf32> -> vector<8x128xf32>
    %19 = arith.addf %17, %18 : vector<8x128xf32>
    %20 = math.tanh %19 : vector<8x128xf32>
    %21 = arith.negf %19 : vector<8x128xf32>
    %22 = math.exp %21 : vector<8x128xf32>
    %cst_10 = arith.constant 1.000000e+00 : f32
    %23 = vector.broadcast %cst_10 : f32 to vector<8x128xf32>
    %24 = arith.addf %23, %22 : vector<8x128xf32>
    %25 = arith.divf %23, %24 : vector<8x128xf32>
    %26 = arith.select %13, %20, %25 : vector<8x128xi1>, vector<8x128xf32>
    %27 = vector.extract_strided_slice %26 {offsets = [0, 0], sizes = [8, 32], strides = [1, 1]} : vector<8x128xf32> to vector<8x32xf32>
    %28 = vector.extract_strided_slice %26 {offsets = [0, 32], sizes = [8, 32], strides = [1, 1]} : vector<8x128xf32> to vector<8x32xf32>
    %29 = vector.extract_strided_slice %26 {offsets = [0, 64], sizes = [8, 32], strides = [1, 1]} : vector<8x128xf32> to vector<8x32xf32>
    %30 = vector.extract_strided_slice %26 {offsets = [0, 96], sizes = [8, 32], strides = [1, 1]} : vector<8x128xf32> to vector<8x32xf32>
    %31 = arith.mulf %29, %15 : vector<8x32xf32>
    %32 = arith.mulf %27, %28 : vector<8x32xf32>
    %33 = arith.addf %31, %32 : vector<8x32xf32>
    %34 = math.tanh %33 : vector<8x32xf32>
    %35 = arith.mulf %30, %34 : vector<8x32xf32>
    %36 = vector.extract_strided_slice %7 {offsets = [1, 0, 0], sizes = [1, 8, 128], strides = [1, 1, 1]} : vector<8x8x128xf32> to vector<1x8x128xf32>
    %37 = vector.shape_cast %36 : vector<1x8x128xf32> to vector<8x128xf32>
    %cst_11 = arith.constant dense<0.000000e+00> : vector<8x128xf32>
    %38 = tpu.matmul %35, %0, %cst_11 {dimension_numbers = #tpu.dot_dimension_numbers<[1], [0], [0], [1], [0, 0, 1, 1], [], []>} : vector<8x32xf32>, vector<32x128xf32>, vector<8x128xf32> -> vector<8x128xf32>
    %39 = arith.addf %37, %38 : vector<8x128xf32>
    %40 = math.tanh %39 : vector<8x128xf32>
    %41 = arith.negf %39 : vector<8x128xf32>
    %42 = math.exp %41 : vector<8x128xf32>
    %cst_12 = arith.constant 1.000000e+00 : f32
    %43 = vector.broadcast %cst_12 : f32 to vector<8x128xf32>
    %44 = arith.addf %43, %42 : vector<8x128xf32>
    %45 = arith.divf %43, %44 : vector<8x128xf32>
    %46 = arith.select %13, %40, %45 : vector<8x128xi1>, vector<8x128xf32>
    %47 = vector.extract_strided_slice %46 {offsets = [0, 0], sizes = [8, 32], strides = [1, 1]} : vector<8x128xf32> to vector<8x32xf32>
    %48 = vector.extract_strided_slice %46 {offsets = [0, 32], sizes = [8, 32], strides = [1, 1]} : vector<8x128xf32> to vector<8x32xf32>
    %49 = vector.extract_strided_slice %46 {offsets = [0, 64], sizes = [8, 32], strides = [1, 1]} : vector<8x128xf32> to vector<8x32xf32>
    %50 = vector.extract_strided_slice %46 {offsets = [0, 96], sizes = [8, 32], strides = [1, 1]} : vector<8x128xf32> to vector<8x32xf32>
    %51 = arith.mulf %49, %33 : vector<8x32xf32>
    %52 = arith.mulf %47, %48 : vector<8x32xf32>
    %53 = arith.addf %51, %52 : vector<8x32xf32>
    %54 = math.tanh %53 : vector<8x32xf32>
    %55 = arith.mulf %50, %54 : vector<8x32xf32>
    %56 = vector.extract_strided_slice %7 {offsets = [2, 0, 0], sizes = [1, 8, 128], strides = [1, 1, 1]} : vector<8x8x128xf32> to vector<1x8x128xf32>
    %57 = vector.shape_cast %56 : vector<1x8x128xf32> to vector<8x128xf32>
    %cst_13 = arith.constant dense<0.000000e+00> : vector<8x128xf32>
    %58 = tpu.matmul %55, %0, %cst_13 {dimension_numbers = #tpu.dot_dimension_numbers<[1], [0], [0], [1], [0, 0, 1, 1], [], []>} : vector<8x32xf32>, vector<32x128xf32>, vector<8x128xf32> -> vector<8x128xf32>
    %59 = arith.addf %57, %58 : vector<8x128xf32>
    %60 = math.tanh %59 : vector<8x128xf32>
    %61 = arith.negf %59 : vector<8x128xf32>
    %62 = math.exp %61 : vector<8x128xf32>
    %cst_14 = arith.constant 1.000000e+00 : f32
    %63 = vector.broadcast %cst_14 : f32 to vector<8x128xf32>
    %64 = arith.addf %63, %62 : vector<8x128xf32>
    %65 = arith.divf %63, %64 : vector<8x128xf32>
    %66 = arith.select %13, %60, %65 : vector<8x128xi1>, vector<8x128xf32>
    %67 = vector.extract_strided_slice %66 {offsets = [0, 0], sizes = [8, 32], strides = [1, 1]} : vector<8x128xf32> to vector<8x32xf32>
    %68 = vector.extract_strided_slice %66 {offsets = [0, 32], sizes = [8, 32], strides = [1, 1]} : vector<8x128xf32> to vector<8x32xf32>
    %69 = vector.extract_strided_slice %66 {offsets = [0, 64], sizes = [8, 32], strides = [1, 1]} : vector<8x128xf32> to vector<8x32xf32>
    %70 = vector.extract_strided_slice %66 {offsets = [0, 96], sizes = [8, 32], strides = [1, 1]} : vector<8x128xf32> to vector<8x32xf32>
    %71 = arith.mulf %69, %53 : vector<8x32xf32>
    %72 = arith.mulf %67, %68 : vector<8x32xf32>
    %73 = arith.addf %71, %72 : vector<8x32xf32>
    %74 = math.tanh %73 : vector<8x32xf32>
    %75 = arith.mulf %70, %74 : vector<8x32xf32>
    %76 = vector.extract_strided_slice %7 {offsets = [3, 0, 0], sizes = [1, 8, 128], strides = [1, 1, 1]} : vector<8x8x128xf32> to vector<1x8x128xf32>
    %77 = vector.shape_cast %76 : vector<1x8x128xf32> to vector<8x128xf32>
    %cst_15 = arith.constant dense<0.000000e+00> : vector<8x128xf32>
    %78 = tpu.matmul %75, %0, %cst_15 {dimension_numbers = #tpu.dot_dimension_numbers<[1], [0], [0], [1], [0, 0, 1, 1], [], []>} : vector<8x32xf32>, vector<32x128xf32>, vector<8x128xf32> -> vector<8x128xf32>
    %79 = arith.addf %77, %78 : vector<8x128xf32>
    %80 = math.tanh %79 : vector<8x128xf32>
    %81 = arith.negf %79 : vector<8x128xf32>
    %82 = math.exp %81 : vector<8x128xf32>
    %cst_16 = arith.constant 1.000000e+00 : f32
    %83 = vector.broadcast %cst_16 : f32 to vector<8x128xf32>
    %84 = arith.addf %83, %82 : vector<8x128xf32>
    %85 = arith.divf %83, %84 : vector<8x128xf32>
    %86 = arith.select %13, %80, %85 : vector<8x128xi1>, vector<8x128xf32>
    %87 = vector.extract_strided_slice %86 {offsets = [0, 0], sizes = [8, 32], strides = [1, 1]} : vector<8x128xf32> to vector<8x32xf32>
    %88 = vector.extract_strided_slice %86 {offsets = [0, 32], sizes = [8, 32], strides = [1, 1]} : vector<8x128xf32> to vector<8x32xf32>
    %89 = vector.extract_strided_slice %86 {offsets = [0, 64], sizes = [8, 32], strides = [1, 1]} : vector<8x128xf32> to vector<8x32xf32>
    %90 = vector.extract_strided_slice %86 {offsets = [0, 96], sizes = [8, 32], strides = [1, 1]} : vector<8x128xf32> to vector<8x32xf32>
    %91 = arith.mulf %89, %73 : vector<8x32xf32>
    %92 = arith.mulf %87, %88 : vector<8x32xf32>
    %93 = arith.addf %91, %92 : vector<8x32xf32>
    %94 = math.tanh %93 : vector<8x32xf32>
    %95 = arith.mulf %90, %94 : vector<8x32xf32>
    %96 = vector.extract_strided_slice %7 {offsets = [4, 0, 0], sizes = [1, 8, 128], strides = [1, 1, 1]} : vector<8x8x128xf32> to vector<1x8x128xf32>
    %97 = vector.shape_cast %96 : vector<1x8x128xf32> to vector<8x128xf32>
    %cst_17 = arith.constant dense<0.000000e+00> : vector<8x128xf32>
    %98 = tpu.matmul %95, %0, %cst_17 {dimension_numbers = #tpu.dot_dimension_numbers<[1], [0], [0], [1], [0, 0, 1, 1], [], []>} : vector<8x32xf32>, vector<32x128xf32>, vector<8x128xf32> -> vector<8x128xf32>
    %99 = arith.addf %97, %98 : vector<8x128xf32>
    %100 = math.tanh %99 : vector<8x128xf32>
    %101 = arith.negf %99 : vector<8x128xf32>
    %102 = math.exp %101 : vector<8x128xf32>
    %cst_18 = arith.constant 1.000000e+00 : f32
    %103 = vector.broadcast %cst_18 : f32 to vector<8x128xf32>
    %104 = arith.addf %103, %102 : vector<8x128xf32>
    %105 = arith.divf %103, %104 : vector<8x128xf32>
    %106 = arith.select %13, %100, %105 : vector<8x128xi1>, vector<8x128xf32>
    %107 = vector.extract_strided_slice %106 {offsets = [0, 0], sizes = [8, 32], strides = [1, 1]} : vector<8x128xf32> to vector<8x32xf32>
    %108 = vector.extract_strided_slice %106 {offsets = [0, 32], sizes = [8, 32], strides = [1, 1]} : vector<8x128xf32> to vector<8x32xf32>
    %109 = vector.extract_strided_slice %106 {offsets = [0, 64], sizes = [8, 32], strides = [1, 1]} : vector<8x128xf32> to vector<8x32xf32>
    %110 = vector.extract_strided_slice %106 {offsets = [0, 96], sizes = [8, 32], strides = [1, 1]} : vector<8x128xf32> to vector<8x32xf32>
    %111 = arith.mulf %109, %93 : vector<8x32xf32>
    %112 = arith.mulf %107, %108 : vector<8x32xf32>
    %113 = arith.addf %111, %112 : vector<8x32xf32>
    %114 = math.tanh %113 : vector<8x32xf32>
    %115 = arith.mulf %110, %114 : vector<8x32xf32>
    %116 = vector.extract_strided_slice %7 {offsets = [5, 0, 0], sizes = [1, 8, 128], strides = [1, 1, 1]} : vector<8x8x128xf32> to vector<1x8x128xf32>
    %117 = vector.shape_cast %116 : vector<1x8x128xf32> to vector<8x128xf32>
    %cst_19 = arith.constant dense<0.000000e+00> : vector<8x128xf32>
    %118 = tpu.matmul %115, %0, %cst_19 {dimension_numbers = #tpu.dot_dimension_numbers<[1], [0], [0], [1], [0, 0, 1, 1], [], []>} : vector<8x32xf32>, vector<32x128xf32>, vector<8x128xf32> -> vector<8x128xf32>
    %119 = arith.addf %117, %118 : vector<8x128xf32>
    %120 = math.tanh %119 : vector<8x128xf32>
    %121 = arith.negf %119 : vector<8x128xf32>
    %122 = math.exp %121 : vector<8x128xf32>
    %cst_20 = arith.constant 1.000000e+00 : f32
    %123 = vector.broadcast %cst_20 : f32 to vector<8x128xf32>
    %124 = arith.addf %123, %122 : vector<8x128xf32>
    %125 = arith.divf %123, %124 : vector<8x128xf32>
    %126 = arith.select %13, %120, %125 : vector<8x128xi1>, vector<8x128xf32>
    %127 = vector.extract_strided_slice %126 {offsets = [0, 0], sizes = [8, 32], strides = [1, 1]} : vector<8x128xf32> to vector<8x32xf32>
    %128 = vector.extract_strided_slice %126 {offsets = [0, 32], sizes = [8, 32], strides = [1, 1]} : vector<8x128xf32> to vector<8x32xf32>
    %129 = vector.extract_strided_slice %126 {offsets = [0, 64], sizes = [8, 32], strides = [1, 1]} : vector<8x128xf32> to vector<8x32xf32>
    %130 = vector.extract_strided_slice %126 {offsets = [0, 96], sizes = [8, 32], strides = [1, 1]} : vector<8x128xf32> to vector<8x32xf32>
    %131 = arith.mulf %129, %113 : vector<8x32xf32>
    %132 = arith.mulf %127, %128 : vector<8x32xf32>
    %133 = arith.addf %131, %132 : vector<8x32xf32>
    %134 = math.tanh %133 : vector<8x32xf32>
    %135 = arith.mulf %130, %134 : vector<8x32xf32>
    %136 = vector.extract_strided_slice %7 {offsets = [6, 0, 0], sizes = [1, 8, 128], strides = [1, 1, 1]} : vector<8x8x128xf32> to vector<1x8x128xf32>
    %137 = vector.shape_cast %136 : vector<1x8x128xf32> to vector<8x128xf32>
    %cst_21 = arith.constant dense<0.000000e+00> : vector<8x128xf32>
    %138 = tpu.matmul %135, %0, %cst_21 {dimension_numbers = #tpu.dot_dimension_numbers<[1], [0], [0], [1], [0, 0, 1, 1], [], []>} : vector<8x32xf32>, vector<32x128xf32>, vector<8x128xf32> -> vector<8x128xf32>
    %139 = arith.addf %137, %138 : vector<8x128xf32>
    %140 = math.tanh %139 : vector<8x128xf32>
    %141 = arith.negf %139 : vector<8x128xf32>
    %142 = math.exp %141 : vector<8x128xf32>
    %cst_22 = arith.constant 1.000000e+00 : f32
    %143 = vector.broadcast %cst_22 : f32 to vector<8x128xf32>
    %144 = arith.addf %143, %142 : vector<8x128xf32>
    %145 = arith.divf %143, %144 : vector<8x128xf32>
    %146 = arith.select %13, %140, %145 : vector<8x128xi1>, vector<8x128xf32>
    %147 = vector.extract_strided_slice %146 {offsets = [0, 0], sizes = [8, 32], strides = [1, 1]} : vector<8x128xf32> to vector<8x32xf32>
    %148 = vector.extract_strided_slice %146 {offsets = [0, 32], sizes = [8, 32], strides = [1, 1]} : vector<8x128xf32> to vector<8x32xf32>
    %149 = vector.extract_strided_slice %146 {offsets = [0, 64], sizes = [8, 32], strides = [1, 1]} : vector<8x128xf32> to vector<8x32xf32>
    %150 = vector.extract_strided_slice %146 {offsets = [0, 96], sizes = [8, 32], strides = [1, 1]} : vector<8x128xf32> to vector<8x32xf32>
    %151 = arith.mulf %149, %133 : vector<8x32xf32>
    %152 = arith.mulf %147, %148 : vector<8x32xf32>
    %153 = arith.addf %151, %152 : vector<8x32xf32>
    %154 = math.tanh %153 : vector<8x32xf32>
    %155 = arith.mulf %150, %154 : vector<8x32xf32>
    %156 = vector.extract_strided_slice %7 {offsets = [7, 0, 0], sizes = [1, 8, 128], strides = [1, 1, 1]} : vector<8x8x128xf32> to vector<1x8x128xf32>
    %157 = vector.shape_cast %156 : vector<1x8x128xf32> to vector<8x128xf32>
    %cst_23 = arith.constant dense<0.000000e+00> : vector<8x128xf32>
    %158 = tpu.matmul %155, %0, %cst_23 {dimension_numbers = #tpu.dot_dimension_numbers<[1], [0], [0], [1], [0, 0, 1, 1], [], []>} : vector<8x32xf32>, vector<32x128xf32>, vector<8x128xf32> -> vector<8x128xf32>
    %159 = arith.addf %157, %158 : vector<8x128xf32>
    %160 = math.tanh %159 : vector<8x128xf32>
    %161 = arith.negf %159 : vector<8x128xf32>
    %162 = math.exp %161 : vector<8x128xf32>
    %cst_24 = arith.constant 1.000000e+00 : f32
    %163 = vector.broadcast %cst_24 : f32 to vector<8x128xf32>
    %164 = arith.addf %163, %162 : vector<8x128xf32>
    %165 = arith.divf %163, %164 : vector<8x128xf32>
    %166 = arith.select %13, %160, %165 : vector<8x128xi1>, vector<8x128xf32>
    %167 = vector.extract_strided_slice %166 {offsets = [0, 0], sizes = [8, 32], strides = [1, 1]} : vector<8x128xf32> to vector<8x32xf32>
    %168 = vector.extract_strided_slice %166 {offsets = [0, 32], sizes = [8, 32], strides = [1, 1]} : vector<8x128xf32> to vector<8x32xf32>
    %169 = vector.extract_strided_slice %166 {offsets = [0, 64], sizes = [8, 32], strides = [1, 1]} : vector<8x128xf32> to vector<8x32xf32>
    %170 = vector.extract_strided_slice %166 {offsets = [0, 96], sizes = [8, 32], strides = [1, 1]} : vector<8x128xf32> to vector<8x32xf32>
    %171 = arith.mulf %169, %153 : vector<8x32xf32>
    %172 = arith.mulf %167, %168 : vector<8x32xf32>
    %173 = arith.addf %171, %172 : vector<8x32xf32>
    %174 = math.tanh %173 : vector<8x32xf32>
    %175 = arith.mulf %170, %174 : vector<8x32xf32>
    %c0_25 = arith.constant 0 : index
    %c0_26 = arith.constant 0 : index
    %176 = vector.load %arg4[%c0_25, %c0_26] : memref<32x8xf32, #tpu.memory_space<vmem>>, vector<32x8xf32>
    %cst_27 = arith.constant dense<0.000000e+00> : vector<8x8xf32>
    %177 = tpu.matmul %175, %176, %cst_27 {dimension_numbers = #tpu.dot_dimension_numbers<[1], [0], [0], [1], [0, 0, 1, 1], [], []>} : vector<8x32xf32>, vector<32x8xf32>, vector<8x8xf32> -> vector<8x8xf32>
    %c0_28 = arith.constant 0 : index
    %c0_29 = arith.constant 0 : index
    %178 = vector.load %arg5[%c0_28, %c0_29] : memref<1x8xf32, #tpu.memory_space<vmem>>, vector<1x8xf32>
    %179 = vector.broadcast %178 : vector<1x8xf32> to vector<8x8xf32>
    %180 = arith.addf %177, %179 : vector<8x8xf32>
    %c0_30 = arith.constant 0 : index
    %c0_31 = arith.constant 0 : index
    %181 = vector.load %arg6[%c0_30, %c0_31] : memref<8x8xf32, #tpu.memory_space<vmem>>, vector<8x8xf32>
    tpu.vector_store %arg6[%c0_30, %c0_31], %180 {strides = array<i32>} : memref<8x8xf32, #tpu.memory_space<vmem>>, vector<8x8xf32>,
    return
  }
}

</mosaic_0001>

<bundles_post_ra>
// kernel: tpu_custom_call.1
= control target key start
LH: loop header
LB: loop body
LE: loop exit
PB: predicated region body
PF: predicated region fallthrough
CT: control target
= control target key end

     0   :  { %v1377_v3 = vmov 0.0   ;;  %vm45_vm0 = vcmask 130048   ;;  %s1666_s0 = inlined_call_operand.vmem [shape: f32[64,16], index: 0, kind: input, shape index: {}]   ;;  %s1667_s1 = inlined_call_operand.vmem [shape: f32[16,128], index: 1, kind: input, shape index: {}]   ;;  %s1668_s2 = inlined_call_operand.vmem [shape: f32[32,128], index: 2, kind: input, shape index: {}]   ;;  %s1669_s3 = inlined_call_operand.vmem [shape: f32[1,128], index: 3, kind: input, shape index: {}]   ;;  %s1670_s4 = inlined_call_operand.vmem [shape: f32[32,8], index: 4, kind: input, shape index: {}]   ;;  %s1671_s5 = inlined_call_operand.vmem [shape: f32[1,8], index: 5, kind: input, shape index: {}]   ;;  %s1672_s6 = inlined_call_operand.hbm [shape: f32[8,8], index: 6, kind: output, shape index: {}]  }
   0x1   :  { %v37_v0 = vld [vmem:[%s1667_s1 + $0x8] sm:$0xff]  ;;  %v1424_v1 = vld [vmem:[%s1668_s2 + $0x18] sm:$0xff]  ;;  %v36_v2 = vld [vmem:[%s1667_s1] sm:$0xff]  ;;  %1186 = vmatprep.subr.mxu1 %v1377_v3 }
   0x2   :  { %1170 = vmatprep.subr.mxu0 %v37_v0  ;;  %v28_v4 = vld [vmem:[%s1666_s0] sm:$0xff]  ;;  %1187 = vmatpush3.msra.mxu1 %v1424_v1  ;;  %v1437_v5 = vld [vmem:[%s1668_s2 + $0x10] sm:$0xff]  ;;  %v29_v6 = vld [vmem:[%s1666_s0 + $0x8] sm:$0xff] }
   0x3   :  { %1171 = vmatpush3.msra.mxu0 %v37_v0 }
   0x4   :  { %11 = vsyncpa [#allocation3], 0  ;;  %1172 = vmatprep.subr.mxu0 %v36_v2  ;;  %1188 = vmatprep.subr.mxu1 %v1377_v3  ;;  %v1447_v7 = vld [vmem:[%s1668_s2 + $0x8] sm:$0xff]  ;;  %v1455_v8 = vld [vmem:[%s1668_s2] sm:$0xff]  ;;  %vm1378_vm1 = vmmov 0   ;;  %v175_v19 = vlaneseq  ;;  %s1380_s13 = smov 64  }
   0x5   :  { %1173 = vmatpush3.msra.mxu0 %v36_v2  ;;  %1174 = vmatprep.mubr.msk.f32.mxu0 %vm45_vm0, %v28_v4  ;;  %v1486_v10 = vld [vmem:[%s1669_s3] ss:$0 sm:$0xff]  ;;  %s1379_s3 = smov 96   ;;  %s1381_s14 = smov 32   ;;  %vm180_vm5 = vcmask 261120   ;;  %v30_v49 = vld [vmem:[%s1666_s0 + $0x10] sm:$0xff] }
   0x6   :  { %1189 = vmatpush3.msra.mxu1 %v1437_v5  ;;  %1175 = vmatmul.mubr.msk.f32.vlgmr.msra.gmra.mxu0 %vm45_vm0, %v29_v6  ;;  %v176_v20 = vand.u32 127, %v175_v19  ;;  %v31_v50 = vld [vmem:[%s1666_s0 + $0x18] sm:$0xff]  ;;  %v32_v51 = vld [vmem:[%s1666_s0 + $0x20] sm:$0xff]  ;;  %v33_v52 = vld [vmem:[%s1666_s0 + $0x28] sm:$0xff]  ;;  %s1382_s11 = smov [#allocation2]   ;;  %vm1073_vm6 = vcmask 64512  }
   0x7   :  { %1190 = vmatprep.subr.mxu1 %v1377_v3  ;;  %1194 = vmatprep.mubr.msk.f32.mxu1 %vm1378_vm1, %v1377_v3  ;;  %v34_v53 = vld [vmem:[%s1666_s0 + $0x30] sm:$0xff]  ;;  %v35_v54 = vld [vmem:[%s1666_s0 + $0x38] sm:$0xff]  ;;  %v988_v21 = vld [vmem:[%s1670_s4 + $0x8] sm:$0xff] }
   0x8   :  { %1191 = vmatpush3.msra.mxu1 %v1447_v7  ;;  %1208 = vmatprep.subr.mxu0 %v1377_v3  ;;  %vm177_vm2 = vcmp.ge.s32.totalorder %v176_v20, 32  ;;  %vm178_vm3 = vcmp.lt.s32.totalorder %v176_v20, 64 }
   0x9   :  { %1192 = vmatprep.subr.mxu1 %v1377_v3  ;;  %1209 = vmatpush3.msra.mxu0 %v1424_v1  ;;  %vm1489_vm4 = vmand %vm177_vm2, %vm178_vm3 }
   0xa   :  { %1193 = vmatpush3.msra.mxu1 %v1455_v8  ;;  %1210 = vmatprep.subr.mxu0 %v1377_v3 }
   0xb   :  { %1195 = vmatmul.mubr.f32.vlgmr.msra.gmra.mxu1 %v1377_v3  ;;  %1197 = vmatprep.subr.mxu1 %v1377_v3 }
   0xc   :  { %1198 = vmatpush3.msra.mxu1 %v1424_v1  ;;  %1205 = vmatprep.mubr.msk.f32.mxu1 %vm1378_vm1, %v1377_v3 }
   0xd   :  { %1199 = vmatprep.subr.mxu1 %v1377_v3  ;;  %1211 = vmatpush3.msra.mxu0 %v1437_v5 }
   0xe   :  { %1200 = vmatpush3.msra.mxu1 %v1437_v5  ;;  %1212 = vmatprep.subr.mxu0 %v1377_v3 }
   0xf   :  { %1201 = vmatprep.subr.mxu1 %v1377_v3  ;;  %1213 = vmatpush3.msra.mxu0 %v1447_v7 }
  0x10   :  { %1202 = vmatpush3.msra.mxu1 %v1447_v7  ;;  %1214 = vmatprep.subr.mxu0 %v1377_v3 }
  0x11   :  { %1203 = vmatprep.subr.mxu1 %v1377_v3  ;;  %1215 = vmatpush3.msra.mxu0 %v1455_v8 }
  0x12   :  { %1204 = vmatpush3.msra.mxu1 %v1455_v8  ;;  %1230 = vmatprep.subr.mxu0 %v1377_v3 }
  0x13   :  { %1219 = vmatprep.subr.mxu1 %v1377_v3  ;;  %1177 = vmatprep.mubr.msk.f32.mxu0 %vm45_vm0, %v30_v49 }
  0x14   :  { %1178 = vmatmul.mubr.msk.f32.gmra.mxu0 %vm45_vm0, %v31_v50 }
  0x15   :  { %1180 = vmatprep.mubr.msk.f32.mxu0 %vm45_vm0, %v32_v51 }
  0x18   :  { %1181 = vmatmul.mubr.msk.f32.gmra.mxu0 %vm45_vm0, %v33_v52 }
  0x19   :  { %1183 = vmatprep.mubr.msk.f32.mxu0 %vm45_vm0, %v34_v53 }
  0x1c   :  { %1184 = vmatmul.mubr.msk.f32.gmra.mxu0 %vm45_vm0, %v35_v54 }
  0x1d   :  { %1216 = vmatprep.mubr.msk.f32.mxu0 %vm1378_vm1, %v1377_v3 }
  0xc6   :  { %v1176_v9 = vpop.f32.mrf.mxu0 }
  0xc7   :  { %v142_v34 = vadd.f32 %v1176_v9, %v1486_v10 }
  0xc8   :  { %v136_v11 = vpop.f32.mrf.mxu0 }
  0xc9   :  { %v137_v12 = vadd.f32 %v1486_v10, %v136_v11 }
  0xcb   :  { %v250_v13 = vpop.f32.mrf.mxu1 }
  0xcc   :  { %v254_v14 = vadd.f32 %v250_v13, %v137_v12 }
  0xcd   :  { %v1196_v15 = vpop.f32.mrf.mxu1 }
  0xce   :  { %v1098_v16 = vmul.f32 -1.442695, %v254_v14 }
  0xd0   :  { %1291 = vpow2.f32 %v1098_v16 }
  0xd1   :  { %1293 = vtanh.f32 %v254_v14 }
  0xd4   :  { %v1179_v59 = vpop.f32.mrf.mxu0 }
  0xd6   :  { %v146_v60 = vpop.f32.mrf.mxu0 }
  0xd7   :  { %v147_v2 = vadd.f32 %v1486_v10, %v146_v60 }
  0xd8   :  { %v1554_v61 = vpop.f32.mrf.mxu0 }
  0xda   :  { %v1556_v62 = vpop.f32.mrf.mxu0 }
  0xdc   :  { %v1558_v63 = vpop.f32.mrf.mxu0 }
  0xdd   :  { %v1292_v17 = vpop.eup %1291 }
  0xde   :  { %v259_v18 = vadd.f32 1.0, %v1292_v17  ;;  %v1294_v22 = vpop.eup %1293  ;;  %v1560_v0 = vpop.f32.mrf.mxu0 }
  0xe0   :  { %1295 = vrcp.f32 %v259_v18 }
  0xed   :  { %v1296_v23 = vpop.eup %1295 }
  0xee   :  { %v262_v24 = vsel %vm1489_vm4, %v1294_v22, %v1296_v23 }
  0xef   :  { %265 = vrot.lane.b32.xlu0 %v262_v24, %s1379_s3  ;;  %v263_v27 = vmul.f32 0.0, %v262_v24 }
 0x161   :  { %v266_v25 = vpop.permute.xlu0 %265 }
 0x162   :  { %v268_v26 = vmul.f32 %v266_v25, %v262_v24 }
 0x164   :  { %270 = vrot.lane.b32.xlu0 %v268_v26, %s1380_s13 }
 0x1d6   :  { %v271_v28 = vpop.permute.xlu0 %270 }
 0x1d7   :  { %v273_v29 = vadd.f32 %v271_v28, %v263_v27  ;;  %v152_v27 = vadd.f32 %v1179_v59, %v1486_v10 }
 0x1d9   :  { %1297 = vtanh.f32 %v273_v29 }
 0x1e6   :  { %v1298_v30 = vpop.eup %1297 }
 0x1e7   :  { %276 = vrot.lane.b32.xlu1 %v1298_v30, %s1381_s14 }
 0x259   :  { %v277_v31 = vpop.permute.xlu1 %276 }
 0x25a   :  { %v279_v32 = vmul.f32 %v277_v31, %v262_v24 }
 0x25c   :  { %281 = vrot.lane.b32.xlu1 %v279_v32, %s1381_s14 }
 0x2ce   :  { %v282_v33 = vpop.permute.xlu1 %281 }
 0x2cf   :  { %1206 = vmatmul.mubr.msk.f32.vlgmr.msra.gmra.mxu1 %vm180_vm5, %v282_v33 }
 0x2d0   :  { %1220 = vmatpush3.msra.mxu1 %v1424_v1  ;;  %1227 = vmatprep.mubr.msk.f32.mxu1 %vm1378_vm1, %v1377_v3 }
 0x2d1   :  { %1221 = vmatprep.subr.mxu1 %v1377_v3 }
 0x2d2   :  { %1222 = vmatpush3.msra.mxu1 %v1437_v5 }
 0x2d3   :  { %1223 = vmatprep.subr.mxu1 %v1377_v3 }
 0x2d4   :  { %1224 = vmatpush3.msra.mxu1 %v1447_v7 }
 0x2d5   :  { %1225 = vmatprep.subr.mxu1 %v1377_v3 }
 0x2d6   :  { %1226 = vmatpush3.msra.mxu1 %v1455_v8 }
 0x2d7   :  { %1241 = vmatprep.subr.mxu1 %v1377_v3 }
 0x38f   :  { %v351_v35 = vpop.f32.mrf.mxu1 }
 0x390   :  { %v355_v36 = vadd.f32 %v351_v35, %v142_v34 }
 0x391   :  { %v1207_v37 = vpop.f32.mrf.mxu1 }
 0x392   :  { %v1100_v38 = vmul.f32 -1.442695, %v355_v36 }
 0x394   :  { %1299 = vpow2.f32 %v1100_v38 }
 0x395   :  { %1301 = vtanh.f32 %v355_v36 }
 0x3a1   :  { %v1300_v39 = vpop.eup %1299 }
 0x3a2   :  { %v360_v40 = vadd.f32 1.0, %v1300_v39  ;;  %v1302_v41 = vpop.eup %1301 }
 0x3a4   :  { %1303 = vrcp.f32 %v360_v40 }
 0x3b1   :  { %v1304_v42 = vpop.eup %1303 }
 0x3b2   :  { %v363_v43 = vsel %vm1489_vm4, %v1302_v41, %v1304_v42 }
 0x3b3   :  { %366 = vrot.lane.b32.xlu0 %v363_v43, %s1379_s3  ;;  %v364_v46 = vmul.f32 %v363_v43, %v273_v29 }
 0x425   :  { %v367_v44 = vpop.permute.xlu0 %366 }
 0x426   :  { %v369_v45 = vmul.f32 %v367_v44, %v363_v43 }
 0x428   :  { %371 = vrot.lane.b32.xlu1 %v369_v45, %s1380_s13 }
 0x49a   :  { %v372_v47 = vpop.permute.xlu1 %371 }
 0x49b   :  { %v374_v48 = vadd.f32 %v372_v47, %v364_v46  ;;  %v157_v46 = vadd.f32 %v1486_v10, %v1556_v62 }
 0x49d   :  { %1305 = vtanh.f32 %v374_v48 }
 0x4aa   :  { %v1306_v55 = vpop.eup %1305 }
 0x4ab   :  { %377 = vrot.lane.b32.xlu0 %v1306_v55, %s1381_s14 }
 0x51d   :  { %v378_v56 = vpop.permute.xlu0 %377 }
 0x51e   :  { %v380_v57 = vmul.f32 %v378_v56, %v363_v43 }
 0x520   :  { %382 = vrot.lane.b32.xlu1 %v380_v57, %s1381_s14 }
 0x592   :  { %v383_v58 = vpop.permute.xlu1 %382 }
 0x593   :  { %1217 = vmatmul.mubr.msk.f32.vlgmr.msra.gmra.mxu0 %vm180_vm5, %v383_v58 }
 0x594   :  { %1231 = vmatpush3.msra.mxu0 %v1424_v1  ;;  %1238 = vmatprep.mubr.msk.f32.mxu0 %vm1378_vm1, %v1377_v3 }
 0x595   :  { %1232 = vmatprep.subr.mxu0 %v1377_v3 }
 0x596   :  { %1233 = vmatpush3.msra.mxu0 %v1437_v5 }
 0x597   :  { %1234 = vmatprep.subr.mxu0 %v1377_v3 }
 0x598   :  { %1235 = vmatpush3.msra.mxu0 %v1447_v7 }
 0x599   :  { %1236 = vmatprep.subr.mxu0 %v1377_v3 }
 0x59a   :  { %1237 = vmatpush3.msra.mxu0 %v1455_v8 }
 0x59b   :  { %1252 = vmatprep.subr.mxu0 %v1377_v3 }
 0x653   :  { %v452_v4 = vpop.f32.mrf.mxu0 }
 0x654   :  { %v456_v6 = vadd.f32 %v452_v4, %v147_v2 }
 0x655   :  { %v1218_v9 = vpop.f32.mrf.mxu0 }
 0x656   :  { %v1102_v11 = vmul.f32 -1.442695, %v456_v6  ;;  %v162_v9 = vadd.f32 %v1554_v61, %v1486_v10 }
 0x658   :  { %1307 = vpow2.f32 %v1102_v11 }
 0x659   :  { %1309 = vtanh.f32 %v456_v6 }
 0x665   :  { %v1308_v12 = vpop.eup %1307 }
 0x666   :  { %v461_v13 = vadd.f32 1.0, %v1308_v12  ;;  %v1310_v14 = vpop.eup %1309 }
 0x668   :  { %1311 = vrcp.f32 %v461_v13 }
 0x675   :  { %v1312_v15 = vpop.eup %1311 }
 0x676   :  { %v464_v16 = vsel %vm1489_vm4, %v1310_v14, %v1312_v15 }
 0x677   :  { %467 = vrot.lane.b32.xlu0 %v464_v16, %s1379_s3  ;;  %v465_v19 = vmul.f32 %v464_v16, %v374_v48 }
 0x6e9   :  { %v468_v17 = vpop.permute.xlu0 %467 }
 0x6ea   :  { %v470_v18 = vmul.f32 %v468_v17, %v464_v16 }
 0x6ec   :  { %472 = vrot.lane.b32.xlu1 %v470_v18, %s1380_s13 }
 0x75e   :  { %v473_v20 = vpop.permute.xlu1 %472 }
 0x75f   :  { %v475_v22 = vadd.f32 %v473_v20, %v465_v19 }
 0x761   :  { %1313 = vtanh.f32 %v475_v22 }
 0x76e   :  { %v1314_v23 = vpop.eup %1313 }
 0x76f   :  { %478 = vrot.lane.b32.xlu0 %v1314_v23, %s1381_s14 }
 0x7e1   :  { %v479_v24 = vpop.permute.xlu0 %478 }
 0x7e2   :  { %v481_v25 = vmul.f32 %v479_v24, %v464_v16 }
 0x7e4   :  { %483 = vrot.lane.b32.xlu1 %v481_v25, %s1381_s14  ;;  %v167_v25 = vadd.f32 %v1486_v10, %v1560_v0 }
 0x856   :  { %v484_v26 = vpop.permute.xlu1 %483 }
 0x857   :  { %1228 = vmatmul.mubr.msk.f32.vlgmr.msra.gmra.mxu1 %vm180_vm5, %v484_v26 }
 0x858   :  { %1242 = vmatpush3.msra.mxu1 %v1424_v1  ;;  %1249 = vmatprep.mubr.msk.f32.mxu1 %vm1378_vm1, %v1377_v3 }
 0x859   :  { %1243 = vmatprep.subr.mxu1 %v1377_v3 }
 0x85a   :  { %1244 = vmatpush3.msra.mxu1 %v1437_v5 }
 0x85b   :  { %1245 = vmatprep.subr.mxu1 %v1377_v3 }
 0x85c   :  { %1246 = vmatpush3.msra.mxu1 %v1447_v7 }
 0x85d   :  { %1247 = vmatprep.subr.mxu1 %v1377_v3 }
 0x85e   :  { %1248 = vmatpush3.msra.mxu1 %v1455_v8 }
 0x85f   :  { %1263 = vmatprep.subr.mxu1 %v1377_v3 }
 0x917   :  { %v553_v28 = vpop.f32.mrf.mxu1 }
 0x918   :  { %v557_v29 = vadd.f32 %v553_v28, %v152_v27 }
 0x919   :  { %v1229_v30 = vpop.f32.mrf.mxu1 }
 0x91a   :  { %v1104_v31 = vmul.f32 -1.442695, %v557_v29 }
 0x91c   :  { %1315 = vpow2.f32 %v1104_v31 }
 0x91d   :  { %1317 = vtanh.f32 %v557_v29 }
 0x929   :  { %v1316_v32 = vpop.eup %1315 }
 0x92a   :  { %v562_v33 = vadd.f32 1.0, %v1316_v32  ;;  %v1318_v34 = vpop.eup %1317 }
 0x92c   :  { %1319 = vrcp.f32 %v562_v33 }
 0x939   :  { %v1320_v35 = vpop.eup %1319 }
 0x93a   :  { %v565_v36 = vsel %vm1489_vm4, %v1318_v34, %v1320_v35 }
 0x93b   :  { %568 = vrot.lane.b32.xlu0 %v565_v36, %s1379_s3  ;;  %v566_v39 = vmul.f32 %v565_v36, %v475_v22 }
 0x9ad   :  { %v569_v37 = vpop.permute.xlu0 %568 }
 0x9ae   :  { %v571_v38 = vmul.f32 %v569_v37, %v565_v36 }
 0x9b0   :  { %573 = vrot.lane.b32.xlu1 %v571_v38, %s1380_s13 }
 0xa22   :  { %v574_v40 = vpop.permute.xlu1 %573 }
 0xa23   :  { %v576_v41 = vadd.f32 %v574_v40, %v566_v39 }
 0xa25   :  { %1321 = vtanh.f32 %v576_v41 }
 0xa32   :  { %v1322_v42 = vpop.eup %1321 }
 0xa33   :  { %579 = vrot.lane.b32.xlu0 %v1322_v42, %s1381_s14 }
 0xaa5   :  { %v580_v43 = vpop.permute.xlu0 %579 }
 0xaa6   :  { %v582_v44 = vmul.f32 %v580_v43, %v565_v36  ;;  %v172_v43 = vadd.f32 %v1558_v63, %v1486_v10 }
 0xaa8   :  { %584 = vrot.lane.b32.xlu1 %v582_v44, %s1381_s14 }
 0xb1a   :  { %v585_v45 = vpop.permute.xlu1 %584 }
 0xb1b   :  { %1239 = vmatmul.mubr.msk.f32.vlgmr.msra.gmra.mxu0 %vm180_vm5, %v585_v45 }
 0xb1c   :  { %1253 = vmatpush3.msra.mxu0 %v1424_v1  ;;  %1260 = vmatprep.mubr.msk.f32.mxu0 %vm1378_vm1, %v1377_v3 }
 0xb1d   :  { %1254 = vmatprep.subr.mxu0 %v1377_v3 }
 0xb1e   :  { %1255 = vmatpush3.msra.mxu0 %v1437_v5 }
 0xb1f   :  { %1256 = vmatprep.subr.mxu0 %v1377_v3 }
 0xb20   :  { %1257 = vmatpush3.msra.mxu0 %v1447_v7 }
 0xb21   :  { %1258 = vmatprep.subr.mxu0 %v1377_v3 }
 0xb22   :  { %1259 = vmatpush3.msra.mxu0 %v1455_v8 }
 0xb23   :  { %1274 = vmatprep.subr.mxu0 %v1377_v3 }
 0xbdb   :  { %v654_v47 = vpop.f32.mrf.mxu0 }
 0xbdc   :  { %v658_v48 = vadd.f32 %v654_v47, %v157_v46 }
 0xbdd   :  { %v1240_v49 = vpop.f32.mrf.mxu0 }
 0xbde   :  { %v1106_v50 = vmul.f32 -1.442695, %v658_v48 }
 0xbe0   :  { %1323 = vpow2.f32 %v1106_v50 }
 0xbe1   :  { %1325 = vtanh.f32 %v658_v48 }
 0xbed   :  { %v1324_v51 = vpop.eup %1323 }
 0xbee   :  { %v663_v52 = vadd.f32 1.0, %v1324_v51  ;;  %v1326_v53 = vpop.eup %1325 }
 0xbf0   :  { %1327 = vrcp.f32 %v663_v52 }
 0xbfd   :  { %v1328_v54 = vpop.eup %1327 }
 0xbfe   :  { %v666_v55 = vsel %vm1489_vm4, %v1326_v53, %v1328_v54 }
 0xbff   :  { %669 = vrot.lane.b32.xlu0 %v666_v55, %s1379_s3  ;;  %v667_v58 = vmul.f32 %v666_v55, %v576_v41 }
 0xc71   :  { %v670_v56 = vpop.permute.xlu0 %669 }
 0xc72   :  { %v672_v57 = vmul.f32 %v670_v56, %v666_v55  ;;  %v990_v56 = vld [vmem:[%s1670_s4 + $0x18] sm:$0xff] }
 0xc74   :  { %674 = vrot.lane.b32.xlu1 %v672_v57, %s1380_s13  ;;  %v989_v57 = vld [vmem:[%s1670_s4 + $0x10] sm:$0xff] }
 0xce6   :  { %v675_v59 = vpop.permute.xlu1 %674 }
 0xce7   :  { %v677_v60 = vadd.f32 %v675_v59, %v667_v58  ;;  %v987_v58 = vld [vmem:[%s1670_s4] sm:$0xff]  ;;  %s1081_s4 = sshll.u32 %s1382_s11, 4  ;;  %s1082_s4 = int_to_ptr.vmem [resolvable:$true] %s1081_s4 }
 0xce8   :  { %s1355_s2 = scalar_lea.vmem %s1082_s4, 128  ;;  %p1360_p1 = scmp.lt.s32.totalorder %s1082_s4, %s1082_s4 }
 0xce9   :  { %1329 = vtanh.f32 %v677_v60  ;;  %p1356_p0 = scmp.ne.s32.totalorder %s1082_s4, %s1355_s2  ;;  %p1361_p2 = scmp.lt.s32.totalorder %s1355_s2, %s1355_s2 }
 0xceb   :  { %p1362_p3 = por %p1361_p2, %p1360_p1 }
 0xced   :  { %p1363_p4 = pnand %p1362_p3, %p1356_p0 }
 0xcf6   :  { %v1330_v62 = vpop.eup %1329 }
 0xcf7   :  { %680 = vrot.lane.b32.xlu0 %v1330_v62, %s1381_s14 }
 0xd69   :  { %v681_v2 = vpop.permute.xlu0 %680 }
 0xd6a   :  { %v683_v4 = vmul.f32 %v681_v2, %v666_v55 }
 0xd6c   :  { %685 = vrot.lane.b32.xlu1 %v683_v4, %s1381_s14  ;;  %v1113_v4 = vld [vmem:[%s1671_s5] ss:$0 sm:$0xff] }
 0xdde   :  { %v686_v6 = vpop.permute.xlu1 %685 }
 0xddf   :  { %1250 = vmatmul.mubr.msk.f32.vlgmr.msra.gmra.mxu1 %vm180_vm5, %v686_v6 }
 0xde0   :  { %1264 = vmatpush3.msra.mxu1 %v1424_v1  ;;  %1271 = vmatprep.mubr.msk.f32.mxu1 %vm1378_vm1, %v1377_v3 }
 0xde1   :  { %1265 = vmatprep.subr.mxu1 %v1377_v3 }
 0xde2   :  { %1266 = vmatpush3.msra.mxu1 %v1437_v5 }
 0xde3   :  { %1267 = vmatprep.subr.mxu1 %v1377_v3 }
 0xde4   :  { %1268 = vmatpush3.msra.mxu1 %v1447_v7 }
 0xde5   :  { %1269 = vmatprep.subr.mxu1 %v1377_v3 }
 0xde6   :  { %1270 = vmatpush3.msra.mxu1 %v1455_v8 }
 0xe9f   :  { %v755_v11 = vpop.f32.mrf.mxu1 }
 0xea0   :  { %v759_v1 = vadd.f32 %v755_v11, %v162_v9 }
 0xea1   :  { %v1251_v12 = vpop.f32.mrf.mxu1 }
 0xea2   :  { %v1108_v13 = vmul.f32 -1.442695, %v759_v1 }
 0xea4   :  { %1331 = vpow2.f32 %v1108_v13 }
 0xea5   :  { %1333 = vtanh.f32 %v759_v1 }
 0xeb1   :  { %v1332_v14 = vpop.eup %1331 }
 0xeb2   :  { %v764_v15 = vadd.f32 1.0, %v1332_v14  ;;  %v1334_v5 = vpop.eup %1333 }
 0xeb4   :  { %1335 = vrcp.f32 %v764_v15 }
 0xec1   :  { %v1336_v16 = vpop.eup %1335 }
 0xec2   :  { %v767_v7 = vsel %vm1489_vm4, %v1334_v5, %v1336_v16 }
 0xec3   :  { %770 = vrot.lane.b32.xlu0 %v767_v7, %s1379_s3  ;;  %v768_v61 = vmul.f32 %v767_v7, %v677_v60 }
 0xf35   :  { %v771_v8 = vpop.permute.xlu0 %770 }
 0xf36   :  { %v773_v17 = vmul.f32 %v771_v8, %v767_v7 }
 0xf38   :  { %775 = vrot.lane.b32.xlu1 %v773_v17, %s1380_s13 }
 0xfaa   :  { %v776_v18 = vpop.permute.xlu1 %775 }
 0xfab   :  { %v778_v19 = vadd.f32 %v776_v18, %v768_v61 }
 0xfad   :  { %1337 = vtanh.f32 %v778_v19 }
 0xfba   :  { %v1338_v20 = vpop.eup %1337 }
 0xfbb   :  { %781 = vrot.lane.b32.xlu0 %v1338_v20, %s1381_s14 }
0x102d   :  { %v782_v22 = vpop.permute.xlu0 %781 }
0x102e   :  { %v784_v23 = vmul.f32 %v782_v22, %v767_v7 }
0x1030   :  { %786 = vrot.lane.b32.xlu1 %v784_v23, %s1381_s14 }
0x10a2   :  { %v787_v24 = vpop.permute.xlu1 %786 }
0x10a3   :  { %1261 = vmatmul.mubr.msk.f32.vlgmr.msra.gmra.mxu0 %vm180_vm5, %v787_v24 }
0x10a4   :  { %1282 = vmatprep.mubr.msk.f32.mxu0 %vm1378_vm1, %v1377_v3  ;;  %1275 = vmatpush3.msra.mxu0 %v990_v56 }
0x10a5   :  { %1276 = vmatprep.subr.mxu0 %v1377_v3 }
0x10a6   :  { %1277 = vmatpush3.msra.mxu0 %v989_v57 }
0x10a7   :  { %1278 = vmatprep.subr.mxu0 %v1377_v3 }
0x10a8   :  { %1279 = vmatpush3.msra.mxu0 %v988_v21 }
0x10a9   :  { %1280 = vmatprep.subr.mxu0 %v1377_v3 }
0x10aa   :  { %1281 = vmatpush3.msra.mxu0 %v987_v58 }
0x1163   :  { %v856_v26 = vpop.f32.mrf.mxu0 }
0x1164   :  { %v860_v27 = vadd.f32 %v856_v26, %v167_v25 }
0x1165   :  { %v1262_v28 = vpop.f32.mrf.mxu0 }
0x1166   :  { %v1110_v29 = vmul.f32 -1.442695, %v860_v27 }
0x1168   :  { %1339 = vpow2.f32 %v1110_v29 }
0x1169   :  { %1341 = vtanh.f32 %v860_v27 }
0x1175   :  { %v1340_v30 = vpop.eup %1339 }
0x1176   :  { %v865_v31 = vadd.f32 1.0, %v1340_v30  ;;  %v1342_v32 = vpop.eup %1341 }
0x1178   :  { %1343 = vrcp.f32 %v865_v31 }
0x1185   :  { %v1344_v33 = vpop.eup %1343 }
0x1186   :  { %v868_v34 = vsel %vm1489_vm4, %v1342_v32, %v1344_v33 }
0x1187   :  { %871 = vrot.lane.b32.xlu0 %v868_v34, %s1379_s3  ;;  %v869_v0 = vmul.f32 %v868_v34, %v778_v19 }
0x11f9   :  { %v872_v35 = vpop.permute.xlu0 %871 }
0x11fa   :  { %v874_v36 = vmul.f32 %v872_v35, %v868_v34 }
0x11fc   :  { %876 = vrot.lane.b32.xlu1 %v874_v36, %s1380_s13 }
0x126e   :  { %v877_v37 = vpop.permute.xlu1 %876 }
0x126f   :  { %v879_v38 = vadd.f32 %v877_v37, %v869_v0 }
0x1271   :  { %1345 = vtanh.f32 %v879_v38 }
0x127e   :  { %v1346_v39 = vpop.eup %1345 }
0x127f   :  { %882 = vrot.lane.b32.xlu0 %v1346_v39, %s1381_s14 }
0x12f1   :  { %v883_v40 = vpop.permute.xlu0 %882 }
0x12f2   :  { %v885_v41 = vmul.f32 %v883_v40, %v868_v34 }
0x12f4   :  { %887 = vrot.lane.b32.xlu1 %v885_v41, %s1381_s14 }
0x1366   :  { %v888_v42 = vpop.permute.xlu1 %887 }
0x1367   :  { %1272 = vmatmul.mubr.msk.f32.vlgmr.msra.gmra.mxu1 %vm180_vm5, %v888_v42 }
0x1427   :  { %v957_v44 = vpop.f32.mrf.mxu1 }
0x1428   :  { %v961_v45 = vadd.f32 %v957_v44, %v172_v43 }
0x1429   :  { %v1273_v46 = vpop.f32.mrf.mxu1 }
0x142a   :  { %v1112_v47 = vmul.f32 -1.442695, %v961_v45 }
0x142c   :  { %1347 = vpow2.f32 %v1112_v47 }
0x142d   :  { %1349 = vtanh.f32 %v961_v45 }
0x1439   :  { %v1348_v48 = vpop.eup %1347 }
0x143a   :  { %v966_v49 = vadd.f32 1.0, %v1348_v48  ;;  %v1350_v50 = vpop.eup %1349 }
0x143c   :  { %1351 = vrcp.f32 %v966_v49 }
0x1449   :  { %v1352_v51 = vpop.eup %1351 }
0x144a   :  { %v969_v52 = vsel %vm1489_vm4, %v1350_v50, %v1352_v51 }
0x144b   :  { %972 = vrot.lane.b32.xlu0 %v969_v52, %s1379_s3  ;;  %v970_v10 = vmul.f32 %v969_v52, %v879_v38 }
0x14bd   :  { %v973_v53 = vpop.permute.xlu0 %972 }
0x14be   :  { %v975_v54 = vmul.f32 %v973_v53, %v969_v52 }
0x14c0   :  { %977 = vrot.lane.b32.xlu1 %v975_v54, %s1380_s13 }
0x1532   :  { %v978_v63 = vpop.permute.xlu1 %977 }
0x1533   :  { %v980_v55 = vadd.f32 %v978_v63, %v970_v10 }
0x1535   :  { %1353 = vtanh.f32 %v980_v55 }
0x1542   :  { %v1354_v59 = vpop.eup %1353 }
0x1543   :  { %983 = vrot.lane.b32.xlu0 %v1354_v59, %s1381_s14 }
0x15b5   :  { %v984_v60 = vpop.permute.xlu0 %983 }
0x15b6   :  { %v986_v62 = vmul.f32 %v984_v60, %v969_v52 }
0x15b8   :  { %999 = vrot.lane.b32.xlu1 %v986_v62, %s1381_s14 }
0x162a   :  { %v1000_v2 = vpop.permute.xlu1 %999 }
0x162b   :  { %1283 = vmatmul.mubr.msk.f32.vlgmr.msra.gmra.mxu0 %vm180_vm5, %v1000_v2 }
0x16eb   :  { %v1069_v6 = vpop.f32.mrf.mxu0 }
0x16ec   :  { %v1070_v3 = vadd.f32 %v1113_v4, %v1069_v6 }
0x16ed   :  { %v1284_v9 = vpop.f32.mrf.mxu0 }
0x16ee   :  { %1074 = vst.msk [vmem:[#allocation2] sm:$0xff] %vm1073_vm6, %v1070_v3 }
0x16ef   :  { %1366 = shalt.err (!%p1363_p4)
}
0x16f0   :  { %1084 = dma.vmem_to_hbm [thread:$0]  %s1082_s4, 128, %s1672_s6, [#allocation3]  }
0x16f1   :  { %1375 = dma.done.wait [#allocation3], 128  }
0x16f2   :  { %1376 = vsyncadd [#allocation3], 4294967168 }
0x16f3   :  { %1088 = vsyncpa [#allocation3], 1 }

</bundles_post_ra>
